<compile_context>
chip_gen: v5e
topology: v5e:2x2
jax: 0.10.0
libtpu: 0.0.40
codegen_flags: <defaults>
</compile_context>

<pallas_src>
import functools
import math

import jax
import jax.numpy as jnp
from jax.experimental import pallas as pl
from jax.experimental.pallas import tpu as pltpu

GAMMA = 2                      # FocalLoss.__init__ default (integer)
EPS = 1e-9
LOG_EPS = math.log(EPS)        # log-space mirror of clamp(p, eps, 1-eps)
LOG_1M_EPS = math.log1p(-EPS)
_LANE = 128


def _focal_loss_kernel(x_ref, t_ref, out_ref, *, gamma, r_tile, hw, needs_mask):
    # Blocks are (C, r_tile, 128): pixels packed on (sublane, lane), classes on
    # the leading axis -> dense (8,128) vregs for every elementwise op.
    x = x_ref[...].astype(jnp.float32)
    t = t_ref[...].astype(jnp.float32)

    # Numerically stable softmax over the (small) class axis.  Axis-0 reduces
    # are pure VPU work (elementwise across the C planes).
    m = jnp.max(x, axis=0, keepdims=True)             # (1, r_tile, 128)
    xm = x - m
    e = jnp.exp(xm)
    se = jnp.sum(e, axis=0, keepdims=True)            # (1, r_tile, 128)
    log_se = jnp.log(se)                              # one log per pixel
    inv_se = pl.reciprocal(se, approx=True)           # EUP; skips VALU refine

    # log(clip(p, eps, 1-eps)) == clip(log p, log eps, log1p(-eps))
    log_p = jnp.clip(xm - log_se, LOG_EPS, LOG_1M_EPS)
    # 1 - clip(p, eps, 1-eps) == clip(1-p, eps, 1-eps), with 1-p = (se-e)/se;
    # avoids materializing p at all.
    omp = jnp.clip((se - e) * inv_se, EPS, 1.0 - EPS)

    # weight = (1-p)**gamma * target.  Integer gamma (incl. 0) -> VPU
    # multiplies; non-integer gamma -> pow fallback.
    if isinstance(gamma, int):
        w = t
        for _ in range(gamma):
            w = w * omp
    else:
        w = t * (omp ** gamma)

    # fl = -(cross_entropy * weight); the sign flip is applied once on the
    # per-tile scalar below instead of on the full (C, r_tile, 128) block.
    fl = (w * t) * log_p

    if needs_mask:
        # Tail tile: rows past the real pixel count read garbage (the block
        # extends past the array).  Garbage never crosses pixel positions
        # before the reductions, so one where on the final product suffices.
        row0 = pl.program_id(1) * r_tile
        rows = jax.lax.broadcasted_iota(jnp.int32, (r_tile, _LANE), 0) + row0
        lanes = jax.lax.broadcasted_iota(jnp.int32, (r_tile, _LANE), 1)
        valid = rows * _LANE + lanes < hw              # (r_tile, 128)
        fl = jnp.where(valid, fl, 0.0)

    part = jnp.sum(fl, axis=0)                         # (r_tile, 128)  VPU
    part = jnp.sum(part, axis=0, keepdims=True)        # (1, 128)       XLU
    out_ref[...] = -jnp.sum(part, axis=1, keepdims=True)   # (1, 1)     XLU


def focal_loss(logits_nchw, target_nchw, *, gamma=GAMMA, tile_rows=512):
    """Focal loss over NCHW logits / targets.  Returns a scalar float32.

    tile_rows: 128-pixel rows per grid step (multiple of 8).  512 -> 65536
    pixels (1 MiB/input block at C=4, ~4 MiB double-buffered); 1024 is fine on
    v6e/v7x for lower per-step overhead while staying well inside VMEM.
    """
    N, C, H, W = logits_nchw.shape
    HW = H * W

    x = logits_nchw.reshape(N, C, HW)                  # free row-major view
    y = target_nchw.reshape(N, C, HW)
    hw_pad = pl.cdiv(HW, _LANE) * _LANE
    if hw_pad != HW:
        # TODO(synk): only hit when H*W % 128 != 0 (pads <=127 px/image, but
        # copies both arrays); a fully pad-free path needs a strided DMA.
        pad = hw_pad - HW
        x = jnp.pad(x, ((0, 0), (0, 0), (0, pad)))
        y = jnp.pad(y, ((0, 0), (0, 0), (0, pad)))

    R = hw_pad // _LANE                                # 128-pixel rows / image
    r_tile = tile_rows if R >= tile_rows else R        # full-extent if small
    num_tiles = pl.cdiv(R, r_tile)
    # Zero-padded pixels (target == 0) already contribute exactly 0; masking is
    # only needed when the last tile runs past the array (garbage reads).
    needs_mask = (R % r_tile) != 0

    x = x.reshape(N, C, R, _LANE)                      # free view
    y = y.reshape(N, C, R, _LANE)

    kernel = functools.partial(_focal_loss_kernel, gamma=gamma, r_tile=r_tile,
                               hw=HW, needs_mask=needs_mask)

    partial = pl.pallas_call(
        kernel,
        out_shape=jax.ShapeDtypeStruct((N, num_tiles, 1), jnp.float32),
        grid_spec=pltpu.PrefetchScalarGridSpec(
            num_scalar_prefetch=0,
            grid=(N, num_tiles),
            in_specs=[
                pl.BlockSpec((None, C, r_tile, _LANE),
                             lambda n, s: (n, 0, s, 0)),
                pl.BlockSpec((None, C, r_tile, _LANE),
                             lambda n, s: (n, 0, s, 0)),
            ],
            out_specs=pl.BlockSpec((None, 1, 1), lambda n, s: (n, s, 0)),
        ),
        compiler_params=pltpu.CompilerParams(
            dimension_semantics=("parallel", "parallel"),
            vmem_limit_bytes=32 * 1024 * 1024,
        ),
    )(x, y)

    # mean over (N, H, W) of the per-pixel class sums; masked / padded pixels
    # contribute exactly 0, so dividing by the real pixel count is exact.
    return jnp.sum(partial) / jnp.float32(N * H * W)


def _focal_loss_reference(logits_nchw, target_nchw, gamma=GAMMA):
    p = jax.nn.softmax(logits_nchw, axis=1)
    p = jnp.clip(p, EPS, 1.0 - EPS)
    ce = -target_nchw * jnp.log(p)
    w = (1.0 - p) ** gamma * target_nchw
    return jnp.mean(jnp.sum(ce * w, axis=1))


if __name__ == "__main__":
    key = jax.random.PRNGKey(0)
    k1, k2 = jax.random.split(key)

    N, C, H, W = 2, 4, 16, 16
    logits = jax.random.normal(k1, (N, C, H, W), dtype=jnp.float32)
    # one-hot targets along the class axis (typical usage of this loss)
    labels = jax.random.randint(k2, (N, H, W), 0, C)
    target = jnp.transpose(
        jax.nn.one_hot(labels, C, dtype=jnp.float32), (0, 3, 1, 2)
    )  # (N, C, H, W)

    loss = jax.block_until_ready(focal_loss(logits, target))
    ref = _focal_loss_reference(logits, target)
    # Tolerance accounts for the approximate EUP reciprocal used only inside
    # the (1-p)**gamma focal weight (bounds the scalar-loss relative error to
    # a few 1e-4); the cross-entropy path uses the exact log-softmax.
    assert jnp.allclose(loss, ref, rtol=1e-3, atol=1e-6), (loss, ref)

    print("KERNEL_OK")
</pallas_src>

<mosaic_0001>
module attributes {stable_mosaic.version = 11 : i64} {
  func.func @_focal_loss_kernel(%arg0: i32, %arg1: i32, %arg2: memref<1x4x2x128xf32, #tpu.memory_space<vmem>>, %arg3: memref<1x4x2x128xf32, #tpu.memory_space<vmem>>, %arg4: memref<1x1x1xf32, #tpu.memory_space<vmem>>) attributes {dimension_semantics = [#tpu.dimension_semantics<parallel>, #tpu.dimension_semantics<parallel>], iteration_bounds = array<i64: 2, 1>, scalar_prefetch = 0 : i64, scratch_operands = 0 : i64, tpu.core_type = #tpu.core_type<tc>, window_params = [{transform_indices = @transform_0, window_bounds = array<i64: 1, 4, 2, 128>}, {transform_indices = @transform_1, window_bounds = array<i64: 1, 4, 2, 128>}, {transform_indices = @transform_2, window_bounds = array<i64: 1, 1, 1>}]} {
    %c0 = arith.constant 0 : index
    %c0_0 = arith.constant 0 : index
    %c0_1 = arith.constant 0 : index
    %c0_2 = arith.constant 0 : index
    %0 = vector.load %arg2[%c0, %c0_0, %c0_1, %c0_2] : memref<1x4x2x128xf32, #tpu.memory_space<vmem>>, vector<1x4x2x128xf32>
    %1 = vector.shape_cast %0 : vector<1x4x2x128xf32> to vector<4x2x128xf32>
    %c0_3 = arith.constant 0 : index
    %c0_4 = arith.constant 0 : index
    %c0_5 = arith.constant 0 : index
    %c0_6 = arith.constant 0 : index
    %2 = vector.load %arg3[%c0_3, %c0_4, %c0_5, %c0_6] : memref<1x4x2x128xf32, #tpu.memory_space<vmem>>, vector<1x4x2x128xf32>
    %3 = vector.shape_cast %2 : vector<1x4x2x128xf32> to vector<4x2x128xf32>
    %cst = arith.constant dense<0xFF800000> : vector<2x128xf32>
    %4 = vector.multi_reduction <maximumf>, %1, %cst [0] : vector<4x2x128xf32> to vector<2x128xf32>
    %5 = vector.shape_cast %4 : vector<2x128xf32> to vector<1x2x128xf32>
    %6 = vector.broadcast %5 : vector<1x2x128xf32> to vector<4x2x128xf32>
    %7 = arith.subf %1, %6 : vector<4x2x128xf32>
    %8 = math.exp %7 : vector<4x2x128xf32>
    %cst_7 = arith.constant dense<0.000000e+00> : vector<2x128xf32>
    %9 = vector.multi_reduction <add>, %8, %cst_7 [0] : vector<4x2x128xf32> to vector<2x128xf32>
    %10 = vector.shape_cast %9 : vector<2x128xf32> to vector<1x2x128xf32>
    %11 = math.log %10 : vector<1x2x128xf32>
    %12 = tpu.reciprocal %10 {approx = true} : vector<1x2x128xf32> -> vector<1x2x128xf32>
    %13 = vector.broadcast %11 : vector<1x2x128xf32> to vector<4x2x128xf32>
    %14 = arith.subf %7, %13 : vector<4x2x128xf32>
    %cst_8 = arith.constant -20.7232666 : f32
    %cst_9 = arith.constant -9.99999971E-10 : f32
    %15 = vector.broadcast %cst_8 : f32 to vector<4x2x128xf32>
    %16 = arith.maximumf %15, %14 : vector<4x2x128xf32>
    %17 = vector.broadcast %cst_9 : f32 to vector<4x2x128xf32>
    %18 = arith.minimumf %17, %16 : vector<4x2x128xf32>
    %19 = vector.broadcast %10 : vector<1x2x128xf32> to vector<4x2x128xf32>
    %20 = arith.subf %19, %8 : vector<4x2x128xf32>
    %21 = vector.broadcast %12 : vector<1x2x128xf32> to vector<4x2x128xf32>
    %22 = arith.mulf %20, %21 : vector<4x2x128xf32>
    %cst_10 = arith.constant 9.99999971E-10 : f32
    %cst_11 = arith.constant 1.000000e+00 : f32
    %23 = vector.broadcast %cst_10 : f32 to vector<4x2x128xf32>
    %24 = arith.maximumf %23, %22 : vector<4x2x128xf32>
    %25 = vector.broadcast %cst_11 : f32 to vector<4x2x128xf32>
    %26 = arith.minimumf %25, %24 : vector<4x2x128xf32>
    %27 = arith.mulf %3, %26 : vector<4x2x128xf32>
    %28 = arith.mulf %27, %26 : vector<4x2x128xf32>
    %29 = arith.mulf %28, %3 : vector<4x2x128xf32>
    %30 = arith.mulf %29, %18 : vector<4x2x128xf32>
    %cst_12 = arith.constant dense<0.000000e+00> : vector<2x128xf32>
    %31 = vector.multi_reduction <add>, %30, %cst_12 [0] : vector<4x2x128xf32> to vector<2x128xf32>
    %cst_13 = arith.constant dense<0.000000e+00> : vector<128xf32>
    %32 = vector.multi_reduction <add>, %31, %cst_13 [0] : vector<2x128xf32> to vector<128xf32>
    %33 = vector.shape_cast %32 : vector<128xf32> to vector<1x128xf32>
    %cst_14 = arith.constant dense<0.000000e+00> : vector<1xf32>
    %34 = vector.multi_reduction <add>, %33, %cst_14 [1] : vector<1x128xf32> to vector<1xf32>
    %35 = vector.shape_cast %34 : vector<1xf32> to vector<1x1xf32>
    %cst_15 = arith.constant 0.000000e+00 : f32
    %36 = vector.broadcast %cst_15 : f32 to vector<1x1xf32>
    %37 = arith.subf %36, %35 : vector<1x1xf32>
    %c0_16 = arith.constant 0 : index
    %c0_17 = arith.constant 0 : index
    %c0_18 = arith.constant 0 : index
    %38 = vector.load %arg4[%c0_16, %c0_17, %c0_18] : memref<1x1x1xf32, #tpu.memory_space<vmem>>, vector<1x1x1xf32>
    %39 = vector.shape_cast %38 : vector<1x1x1xf32> to vector<1x1xf32>
    %40 = vector.shape_cast %37 : vector<1x1xf32> to vector<1x1x1xf32>
    tpu.vector_store %arg4[%c0_16, %c0_17, %c0_18], %40 {strides = array<i32>} : memref<1x1x1xf32, #tpu.memory_space<vmem>>, vector<1x1x1xf32>,
    return
  }
  func.func @transform_0(%arg0: i32, %arg1: i32) -> (i32, i32, i32, i32) {
    %c0_i32 = arith.constant 0 : i32
    %c0_i32_0 = arith.constant 0 : i32
    %c0_i32_1 = arith.constant 0 : i32
    return %arg0, %c0_i32, %arg1, %c0_i32_0 : i32, i32, i32, i32
  }
  func.func @transform_1(%arg0: i32, %arg1: i32) -> (i32, i32, i32, i32) {
    %c0_i32 = arith.constant 0 : i32
    %c0_i32_0 = arith.constant 0 : i32
    %c0_i32_1 = arith.constant 0 : i32
    return %arg0, %c0_i32, %arg1, %c0_i32_0 : i32, i32, i32, i32
  }
  func.func @transform_2(%arg0: i32, %arg1: i32) -> (i32, i32, i32) {
    %c0_i32 = arith.constant 0 : i32
    %c0_i32_0 = arith.constant 0 : i32
    return %arg0, %arg1, %c0_i32 : i32, i32, i32
  }
}

</mosaic_0001>

<bundles_post_ra>
// kernel: tpu_custom_call.1
= control target key start
LH: loop header
LB: loop body
LE: loop exit
PB: predicated region body
PF: predicated region fallthrough
CT: control target
= control target key end

     0   :  { %7 = vsyncpa [#allocation3], 0  ;;  %s786_s0 = inlined_call_operand.hbm [shape: f32[2,4,2,128], index: 0, kind: input, shape index: {}]   ;;  %s787_s1 = inlined_call_operand.hbm [shape: f32[2,4,2,128], index: 1, kind: input, shape index: {}]   ;;  %s788_s2 = inlined_call_operand.vmem [shape: f32[2,1,1], index: 2, kind: output, shape index: {}]  }
   0x1   :  { %9 = vsyncpa [#allocation3 + $0x1], 0 }
   0x2   :  { %10 = vsyncpa [#allocation5], 0 }
   0x3   :  { %12 = vsyncpa [#allocation5 + $0x1], 0  ;;  %s659_s9 = smov 0   ;;  %s661_s10 = smov 0  }
   0x4   :  { %s663_s11 = smov 0   ;;  %s665_s12 = smov 0  }
   0x5   :  { %s667_s13 = smov 0   ;;  %s669_s14 = smov 0  }
   0x6 LB: > { %s435_s15 = sadd.s32 4294967295, %s640_s14   ;;  %s30_s16 = sadd.s32 1, %s636_s13  ;;  %s640_s14 = sphi %s669_s14, %s18_s14   ;;  %s636_s13 = sphi %s667_s13, %s796_s13   ;;  %s632_s12 = sphi %s665_s12, %s795_s12   ;;  %s628_s11 = sphi %s663_s11, %s794_s11   ;;  %s624_s10 = sphi %s661_s10, %s793_s10   ;;  %s620_s9 = sphi %s659_s9, %s792_s9  }
   0x7   : > { %p32_p0 = scmp.ge.s32.totalorder %s30_s16, 2  ;;  %s39_s17 = sadd.s32 1, %s628_s11 }
   0x8   : > { %p46_p1 = scmp.ne.s32.totalorder %s628_s11, %s624_s10  ;;  %p47_p2 = scmp.eq.s32.totalorder %s640_s14, 0 }
   0x9   : > { %s798_s16 = smov (%p32_p0, %s30_s16), 0  ;;  %p52_p4 = scmp.ne.s32.totalorder %s624_s10, %s620_s9 }
   0xa   : > { %p695_p3 = por %p47_p2, %p46_p1  ;;  %s34_s19 = ssub.s32 %s636_s13, %s798_s16 }
   0xb   : > { %p53_p5 = scmp.eq.s32.totalorder %s435_s15, 0  ;;  %p37_p6 = scmp.eq.s32.totalorder %s34_s19, 0 }
   0xc   : > { %p463_p8 = scmp.lt.s32.totalorder %s640_s14, 2  ;;  %s711_s22 = sand.u32 1, %s628_s11  }
   0xd   : > { %p702_p7 = por %p53_p5, %p52_p4  ;;  %s450_s23 = sshll.u32 %s636_s13, 3 }
   0xe   : > { %s708_s21 = scalar_select %p37_p6, %s628_s11, %s39_s17  }
   0xf   : > { %s439_s24 = sshll.u32 %s711_s22, 3  ;;  %s142_s27 = scalar_lea.hbm %s786_s0, %s450_s23 }
  0x10   : > { %s143_s28 = sshll.u32 %s142_s27, 4  ;;  %s136_s29 = scalar_lea.vmem [#allocation2], %s439_s24  ;;  %s144_s28 = int_to_ptr.hbm [resolvable:$true] %s143_s28 }
  0x11   : > { %s145_s30 = sshll.u32 %s136_s29, 4  ;;  %p720_p9 = pnand %p463_p8, %p695_p3  ;;  %s146_s30 = int_to_ptr.vmem [resolvable:$true] %s145_s30 }
  0x12   : > { %p445_p10 = scmp.ge.s32.totalorder %s640_s14, 1  ;;  %p176_p11 = scmp.lt.s32.totalorder %s640_s14, 3 }
  0x13   : > { %s133_s4 = scalar_lea.sflag [#allocation3], %s711_s22  ;;  %s642_s5 = smov 32  }
  0x14   : > { %s643_s6 = smov 2   ;;  %p177_p12 = pnand %p445_p10, %p176_p11 }
  0x15   : > { %459 = dma.hbm_to_vmem [thread:$0]  (!%p720_p9), %s144_s28, 128, %s146_s30, %s133_s4, %s642_s5, %s642_s5, %s643_s6  }
  0x16   : > { %s165_s9 = scalar_lea.hbm %s787_s1, %s450_s23  ;;  %s159_s17 = scalar_lea.vmem [#allocation4], %s439_s24 }
  0x17   : > { %s166_s15 = sshll.u32 %s165_s9, 4  ;;  %s168_s18 = sshll.u32 %s159_s17, 4  ;;  %s167_s15 = int_to_ptr.hbm [resolvable:$true] %s166_s15  ;;  %s169_s18 = int_to_ptr.vmem [resolvable:$true] %s168_s18 }
  0x18   : > { %s156_s19 = scalar_lea.sflag [#allocation5], %s711_s22  ;;  %180 = sbr.rel (%p177_p12) target bundleno = 219 (0xdb), region = 28 }
  0x19   : > { %462 = dma.hbm_to_vmem [thread:$0]  (!%p720_p9), %s167_s15, 128, %s169_s18, %s156_s19, %s642_s5, %s642_s5, %s643_s6  }
  0x1a   : > { %s182_s25 = sand.u32 (!%p177_p12), 1, %s624_s10  }
  0x1b   : > { %s446_s26 = sshll.u32 (!%p177_p12), %s182_s25, 3  ;;  %s183_s27 = scalar_lea.sflag (!%p177_p12), [#allocation3], %s182_s25 }
  0x1c   : > { %s186_s28 = scalar_lea.vmem (!%p177_p12), [#allocation2], %s446_s26 }
  0x1d   : > { %611 = dma.done.wait (%p702_p7), %s183_s27, 128  }
  0x1e   : > { %613 = vsyncadd (%p702_p7), %s183_s27, 4294967168  ;;  %s193_s23 = scalar_lea.sflag [#allocation5], %s182_s25  ;;  %s740_s24 = scalar_lea.vmem [#allocation4], %s446_s26 }
  0x1f   : > { %615 = dma.done.wait (%p702_p7), %s193_s23, 128  }
  0x20   : > { %617 = vsyncadd (%p702_p7), %s193_s23, 4294967168  ;;  %vm238_vm0 = vcmask 1041408   ;;  %v230_v0 = vld [vmem:[%s186_s28] sm:$0x3]  ;;  %v231_v1 = vld [vmem:[%s186_s28 + $0x2] sm:$0x3] }
  0x21   : > { %v232_v2 = vld [vmem:[%s186_s28 + $0x4] sm:$0x3]  ;;  %v233_v3 = vld [vmem:[%s186_s28 + $0x6] sm:$0x3]  ;;  %v239_v4 = vsel %vm238_vm0, %v230_v0, -inf  ;;  %v240_v5 = vsel %vm238_vm0, %v231_v1, -inf }
  0x22   : > { %v241_v6 = vsel %vm238_vm0, %v232_v2, -inf  ;;  %v242_v7 = vsel %vm238_vm0, %v233_v3, -inf  ;;  %v243_v8 = vmax.f32 %v239_v4, %v240_v5  ;;  %v234_v48 = vld [vmem:[%s740_s24] sm:$0x3]  ;;  %v235_v49 = vld [vmem:[%s740_s24 + $0x2] sm:$0x3] }
  0x23   : > { %v244_v9 = vmax.f32 %v241_v6, %v242_v7  ;;  %v236_v50 = vld [vmem:[%s740_s24 + $0x4] sm:$0x3]  ;;  %v237_v55 = vld [vmem:[%s740_s24 + $0x6] sm:$0x3]  ;;  %p224_p13 = scmp.lt.s32.totalorder %s632_s12, 1  ;;  %vm329_vm1 = vcmask 0  }
  0x25   : > { %v245_v10 = vmax.f32 %v243_v8, %v244_v9  ;;  %s800_s12 = smov (!%p224_p13, %s632_s12), 1 }
  0x26   : > { %s229_s29 = scalar_lea.vmem %s788_s2, %s800_s12 }
  0x27   : > { %v246_v11 = vsub.f32 %v230_v0, %v245_v10  ;;  %v247_v12 = vsub.f32 %v231_v1, %v245_v10  ;;  %v248_v13 = vsub.f32 %v232_v2, %v245_v10  ;;  %v249_v14 = vsub.f32 %v233_v3, %v245_v10 }
  0x29   : > { %v250_v15 = vmul.f32 1.442695, %v246_v11  ;;  %v252_v16 = vmul.f32 1.442695, %v247_v12  ;;  %v254_v17 = vmul.f32 1.442695, %v248_v13 }
  0x2a   : > { %v256_v18 = vmul.f32 1.442695, %v249_v14 }
  0x2b   : > { %514 = vpow2.f32 %v250_v15 }
  0x2c   : > { %516 = vpow2.f32 %v252_v16 }
  0x2d   : > { %518 = vpow2.f32 %v254_v17 }
  0x2e   : > { %520 = vpow2.f32 %v256_v18 }
  0x31   : > { %v515_v19 = vpop.eup %514 }
  0x32   : > { %v517_v20 = vpop.eup %516  ;;  %v258_v21 = vsel %vm238_vm0, %v515_v19, 0.0 }
  0x33   : > { %v519_v22 = vpop.eup %518  ;;  %v259_v23 = vsel %vm238_vm0, %v517_v20, 0.0 }
  0x34   : > { %v521_v24 = vpop.eup %520  ;;  %v260_v25 = vadd.f32 %v259_v23, %v258_v21  ;;  %v261_v26 = vsel %vm238_vm0, %v519_v22, 0.0 }
  0x35   : > { %v263_v27 = vsel %vm238_vm0, %v521_v24, 0.0 }
  0x36   : > { %v262_v28 = vadd.f32 %v261_v26, %v260_v25 }
  0x38   : > { %v264_v29 = vadd.f32 %v263_v27, %v262_v28 }
  0x3a   : > { %522 = vlog2.f32 %v264_v29  ;;  %v280_v30 = vsub.f32 %v264_v29, %v515_v19  ;;  %v281_v31 = vsub.f32 %v264_v29, %v517_v20  ;;  %v282_v32 = vsub.f32 %v264_v29, %v519_v22 }
  0x3b   : > { %524 = vrcp.f32 %v264_v29  ;;  %v283_v33 = vsub.f32 %v264_v29, %v521_v24 }
  0x40   : > { %v523_v34 = vpop.eup %522 }
  0x41   : > { %v525_v35 = vpop.eup %524  ;;  %v266_v36 = vmul.f32 0.6931472, %v523_v34 }
  0x42   : > { %v284_v37 = vmul.f32 %v525_v35, %v280_v30  ;;  %v285_v38 = vmul.f32 %v525_v35, %v281_v31  ;;  %v286_v39 = vmul.f32 %v525_v35, %v282_v32  ;;  %v287_v40 = vmul.f32 %v525_v35, %v283_v33 }
  0x43   : > { %v268_v41 = vsub.f32 %v246_v11, %v266_v36  ;;  %v269_v42 = vsub.f32 %v247_v12, %v266_v36  ;;  %v270_v43 = vsub.f32 %v248_v13, %v266_v36  ;;  %v271_v44 = vsub.f32 %v249_v14, %v266_v36 }
  0x44   : > { %v288_v45 = vmax.f32 %v284_v37, 1e-09  ;;  %v289_v46 = vmax.f32 %v285_v38, 1e-09  ;;  %v290_v47 = vmax.f32 %v286_v39, 1e-09 }
  0x45   : > { %v272_v51 = vmax.f32 %v268_v41, -20.723267  ;;  %v291_v52 = vmax.f32 %v287_v40, 1e-09  ;;  %v273_v56 = vmax.f32 %v269_v42, -20.723267 }
  0x46   : > { %v292_v53 = vmin.f32 %v288_v45, 1.0  ;;  %v293_v54 = vmin.f32 %v289_v46, 1.0  ;;  %v274_v57 = vmax.f32 %v270_v43, -20.723267  ;;  %v275_v58 = vmax.f32 %v271_v44, -20.723267 }
  0x47   : > { %v294_v59 = vmin.f32 %v290_v47, 1.0  ;;  %v295_v60 = vmin.f32 %v291_v52, 1.0  ;;  %v276_v63 = vmin.f32 %v272_v51, -1e-09  ;;  %v277_v3 = vmin.f32 %v273_v56, -1e-09 }
  0x48   : > { %v296_v61 = vmul.f32 %v292_v53, %v234_v48  ;;  %v297_v62 = vmul.f32 %v293_v54, %v235_v49  ;;  %v278_v4 = vmin.f32 %v274_v57, -1e-09  ;;  %v279_v6 = vmin.f32 %v275_v58, -1e-09 }
  0x49   : > { %v298_v0 = vmul.f32 %v294_v59, %v236_v50  ;;  %v299_v1 = vmul.f32 %v295_v60, %v237_v55 }
  0x4a   : > { %v300_v2 = vmul.f32 %v296_v61, %v292_v53  ;;  %v301_v5 = vmul.f32 %v297_v62, %v293_v54 }
  0x4b   : > { %v302_v7 = vmul.f32 %v298_v0, %v294_v59  ;;  %v303_v8 = vmul.f32 %v299_v1, %v295_v60 }
  0x4c   : > { %v304_v9 = vmul.f32 %v300_v2, %v234_v48  ;;  %v305_v10 = vmul.f32 %v301_v5, %v235_v49 }
  0x4d   : > { %v306_v11 = vmul.f32 %v302_v7, %v236_v50  ;;  %v307_v12 = vmul.f32 %v303_v8, %v237_v55 }
  0x4e   : > { %v308_v13 = vmul.f32 %v304_v9, %v276_v63  ;;  %v309_v14 = vmul.f32 %v305_v10, %v277_v3 }
  0x4f   : > { %v310_v15 = vmul.f32 %v306_v11, %v278_v4  ;;  %v311_v16 = vmul.f32 %v307_v12, %v279_v6 }
  0x50   : > { %v312_v17 = vsel %vm238_vm0, %v308_v13, 0.0  ;;  %v313_v18 = vsel %vm238_vm0, %v309_v14, 0.0 }
  0x51   : > { %v314_v19 = vadd.f32 %v313_v18, %v312_v17  ;;  %v315_v20 = vsel %vm238_vm0, %v310_v15, 0.0  ;;  %v317_v21 = vsel %vm238_vm0, %v311_v16, 0.0 }
  0x53   : > { %v316_v22 = vadd.f32 %v315_v20, %v314_v19 }
  0x55   : > { %v318_v23 = vadd.f32 %v317_v21, %v316_v22 }
  0x57   : > { %v319_v24 = vsel %vm238_vm0, %v318_v23, 0.0 }
  0x58   : > { %v320_v25 = vrot.slane %v319_v24, 4 }
  0x5a   : > { %v321_v26 = vadd.f32 %v320_v25, %v319_v24 }
  0x5c   : > { %v322_v27 = vrot.slane %v321_v26, 2 }
  0x5e   : > { %v323_v28 = vadd.f32 %v322_v27, %v321_v26 }
  0x60   : > { %v324_v29 = vrot.slane %v323_v28, 1 }
  0x62   : > { %v325_v30 = vadd.f32 %v324_v29, %v323_v28 }
  0x64   : > { %326 = vadd.xlane.f32.xlu0 %v325_v30 }
  0xd7   : > { %v327_v31 = vpop.xlane.xlu0 %326 }
  0xd8   : > { %v328_v32 = vsub.f32 0.0, %v327_v31 }
  0xda   : > { %330 = vst.msk [vmem:[%s229_s29] sm:$0x1] %vm329_vm1, %v328_v32 }
  0xdb PF: > { %s18_s14 = sadd.s32 1, %s640_s14   ;;  %s792_s9 = smov %s624_s10 }
  0xdc   : > { %p15_p0 = scmp.ge.s32.totalorder %s18_s14, 4   ;;  %s793_s10 = smov %s628_s11 }
  0xdd   : > { %s794_s11 = smov %s708_s21  ;;  %s795_s12 = smov %s636_s13 }
  0xde   : > { %s796_s13 = smov %s798_s16  ;;  %17 = sbr.rel (!%p15_p0) target bundleno = 6 (0x6), region = 81 }
  0xe3   :  { %354 = vsyncpa [#allocation3], 1 }
  0xe4   :  { %356 = vsyncpa [#allocation3 + $0x1], 1 }
  0xe5   :  { %357 = vsyncpa [#allocation5], 1 }
  0xe6   :  { %359 = vsyncpa [#allocation5 + $0x1], 1 }

</bundles_post_ra>
